<compile_context>
chip_gen: v5e
topology: v5e:2x2
jax: 0.10.0
libtpu: 0.0.40
codegen_flags: <defaults>
</compile_context>

<pallas_src>
import functools
import math

import jax
import jax.numpy as jnp
from jax.experimental import pallas as pl
from jax.experimental.pallas import tpu as pltpu

LANE = 128


# ----------------------------------------------------------------------------
# Helpers
# ----------------------------------------------------------------------------
def _round_up(n, m):
    return ((n + m - 1) // m) * m


def _pad2(x, rows, cols):
    """Zero-pad a 2-D array up to (rows, cols)."""
    return jnp.pad(x, ((0, rows - x.shape[0]), (0, cols - x.shape[1])))


def _vmem_limit_bytes(shapes, dtype_bytes=4, slack=8 << 20):
    """Conservative scoped-VMEM budget: double-buffered tiles + headroom."""
    total = sum(math.prod(s) for s in shapes) * dtype_bytes
    est = 2 * total + slack
    return int(min(max(est, 32 << 20), 64 << 20))


# ----------------------------------------------------------------------------
# Pallas kernels
# ----------------------------------------------------------------------------
def _sage_layer_kernel(x_tile_ref, x_full_ref, w_self_ref, w_neigh_ref, b_ref,
                       adj_ref, out_ref, *, apply_relu, mxu_dtype):
    """One dense SAGEConv('mean') layer on a tile of TILE_V destination nodes.

    x_tile: (TILE_V, F_in)   dst-node features (self term)
    x_full: (N, F_in)        all src features, VMEM-resident across the grid
    w_self, w_neigh: (F_in, F_out)
    b:      (1, F_out)
    adj:    (TILE_V, N)      dst-major adjacency tile, adj[v, u] = 1 iff edge u -> v
    out:    (TILE_V, F_out)
    """
    adj = adj_ref[...]
    # In-degree: lane reduction on the streamed tile. Mean over zero in-edges is 0.
    deg = jnp.sum(adj, axis=-1, keepdims=True)                       # (TILE_V, 1)
    inv_deg = jnp.where(deg > 0, 1.0 / jnp.maximum(deg, 1.0), 0.0)

    # Neighbor mean: (TILE_V, N) @ (N, F_in) — canonical row-major MXU matmul,
    # bf16 operands / f32 accumulation.
    neigh_sum = jnp.dot(adj.astype(mxu_dtype), x_full_ref[...].astype(mxu_dtype),
                        preferred_element_type=jnp.float32)          # (TILE_V, F_in)
    neigh_mean = neigh_sum * inv_deg

    h_neigh = jnp.dot(neigh_mean.astype(mxu_dtype),
                      w_neigh_ref[...].astype(mxu_dtype),
                      preferred_element_type=jnp.float32)            # (TILE_V, F_out)
    h_self = jnp.dot(x_tile_ref[...].astype(mxu_dtype),
                     w_self_ref[...].astype(mxu_dtype),
                     preferred_element_type=jnp.float32)             # (TILE_V, F_out)

    rst = h_self + h_neigh + b_ref[...]
    if apply_relu:
        rst = jnp.maximum(rst, jnp.float32(0.0))
    out_ref[...] = rst.astype(out_ref.dtype)


def _edge_mlp_kernel(hu_ref, hv_ref, w1_ref, b1_ref, sc_ref, sh_ref,
                     w2_ref, b2_ref, out_ref, *, mxu_dtype):
    """MLPPredictor.apply_edges on a tile of TILE_E edges.

    score = W2( relu( BN( W1(h_u * h_v) ) ) )  — BN in inference (running-stat) form.
    All dims are lane-dense (padded to multiples of 128) so stores are unmasked.
    """
    z = hu_ref[...] * hv_ref[...]                                    # (TILE_E, F)
    x = jnp.dot(z.astype(mxu_dtype), w1_ref[...].astype(mxu_dtype),
                preferred_element_type=jnp.float32) + b1_ref[...]
    x = x * sc_ref[...] + sh_ref[...]                                # BatchNorm1d (eval)
    x = jnp.maximum(x, jnp.float32(0.0))
    s = jnp.dot(x.astype(mxu_dtype), w2_ref[...].astype(mxu_dtype),
                preferred_element_type=jnp.float32) + b2_ref[...]
    out_ref[...] = s.astype(out_ref.dtype)


# ----------------------------------------------------------------------------
# Wrappers
# ----------------------------------------------------------------------------
def sage_conv(x, w_self, w_neigh, bias, adj_t, *, apply_relu, tile_v,
              mxu_dtype=jnp.bfloat16):
    """One SAGEConv layer, gridded over destination-node tiles."""
    n_pad, f_in = x.shape
    f_out = w_self.shape[1]
    grid = (n_pad // tile_v,)

    kernel = functools.partial(_sage_layer_kernel, apply_relu=apply_relu,
                               mxu_dtype=mxu_dtype)
    vmem = _vmem_limit_bytes([(tile_v, f_in), (n_pad, f_in), (f_in, f_out),
                              (f_in, f_out), (1, f_out), (tile_v, n_pad),
                              (tile_v, f_out)])
    return pl.pallas_call(
        kernel,
        out_shape=jax.ShapeDtypeStruct((n_pad, f_out), jnp.float32),
        grid=grid,
        in_specs=[
            pl.BlockSpec((tile_v, f_in), lambda i: (i, 0)),   # x tile (self term)
            pl.BlockSpec((n_pad, f_in), lambda i: (0, 0)),    # x full (resident)
            pl.BlockSpec((f_in, f_out), lambda i: (0, 0)),    # w_self
            pl.BlockSpec((f_in, f_out), lambda i: (0, 0)),    # w_neigh
            pl.BlockSpec((1, f_out), lambda i: (0, 0)),       # bias
            pl.BlockSpec((tile_v, n_pad), lambda i: (i, 0)),  # adj_t tile (dst-major)
        ],
        out_specs=pl.BlockSpec((tile_v, f_out), lambda i: (i, 0)),
        compiler_params=pltpu.CompilerParams(
            dimension_semantics=("parallel",),
            vmem_limit_bytes=vmem),
    )(x, x, w_self, w_neigh, bias, adj_t)


def edge_mlp(h_u, h_v, w1, b1, bn_scale, bn_shift, w2, b2, *, tile_e,
             mxu_dtype=jnp.bfloat16):
    """Per-edge MLP predictor, gridded over edge tiles (weights resident)."""
    e_pad, f = h_u.shape
    hdim = w1.shape[1]
    odim = w2.shape[1]
    grid = (e_pad // tile_e,)

    kernel = functools.partial(_edge_mlp_kernel, mxu_dtype=mxu_dtype)
    vmem = _vmem_limit_bytes([(tile_e, f), (tile_e, f), (f, hdim), (1, hdim),
                              (1, hdim), (1, hdim), (hdim, odim), (1, odim),
                              (tile_e, odim)])
    return pl.pallas_call(
        kernel,
        out_shape=jax.ShapeDtypeStruct((e_pad, odim), jnp.float32),
        grid=grid,
        in_specs=[
            pl.BlockSpec((tile_e, f), lambda i: (i, 0)),
            pl.BlockSpec((tile_e, f), lambda i: (i, 0)),
            pl.BlockSpec((f, hdim), lambda i: (0, 0)),
            pl.BlockSpec((1, hdim), lambda i: (0, 0)),
            pl.BlockSpec((1, hdim), lambda i: (0, 0)),
            pl.BlockSpec((1, hdim), lambda i: (0, 0)),
            pl.BlockSpec((hdim, odim), lambda i: (0, 0)),
            pl.BlockSpec((1, odim), lambda i: (0, 0)),
        ],
        out_specs=pl.BlockSpec((tile_e, odim), lambda i: (i, 0)),
        compiler_params=pltpu.CompilerParams(
            dimension_semantics=("parallel",),
            vmem_limit_bytes=vmem),
    )(h_u, h_v, w1, b1, bn_scale, bn_shift, w2, b2)


def _rsage(pp, x, adj_t, *, tile_v, mxu_dtype):
    """RSAGEConv: SAGE1 -> relu -> SAGE2 (single relation)."""
    h1 = sage_conv(x, pp["w1_self"], pp["w1_neigh"], pp["b1"], adj_t,
                   apply_relu=True, tile_v=tile_v, mxu_dtype=mxu_dtype)
    h2 = sage_conv(h1, pp["w2_self"], pp["w2_neigh"], pp["b2"], adj_t,
                   apply_relu=False, tile_v=tile_v, mxu_dtype=mxu_dtype)
    return h2


def matchsage_forward(params, x1, x2, adj, g_src, g_dst,
                      pos_src, pos_dst, neg_src, neg_dst,
                      *, tile_v=128, tile_e=128, mxu_dtype=jnp.bfloat16):
    """MatchSAGE.forward: (pos_score, neg_score, rating_score)."""
    tile_v = _round_up(tile_v, 8)
    tile_e = _round_up(tile_e, 8)

    n, in_f = x1.shape
    hid = params["w1_self"].shape[1]
    out_f = params["w2_self"].shape[1]
    mlp_hid = params["mlp_w1"].shape[1]
    n_cls = params["mlp_w2"].shape[1]

    n_pad = _round_up(n, tile_v)
    in_pad = _round_up(in_f, LANE)
    hid_pad = _round_up(hid, LANE)
    out_pad = _round_up(out_f, LANE)
    mlp_hid_pad = _round_up(mlp_hid, LANE)
    cls_pad = _round_up(n_cls, LANE)

    # Lane-dense, tile-aligned zero padding (exact semantics after slicing).
    x1p = _pad2(x1, n_pad, in_pad)
    x2p = _pad2(x2, n_pad, in_pad)
    adj_t = _pad2(adj.T, n_pad, n_pad)     # dst-major: adj_t[v, u] = 1 iff u -> v

    pp = {
        "w1_self":  _pad2(params["w1_self"], in_pad, hid_pad),
        "w1_neigh": _pad2(params["w1_neigh"], in_pad, hid_pad),
        "b1":       _pad2(params["b1"], 1, hid_pad),
        "w2_self":  _pad2(params["w2_self"], hid_pad, out_pad),
        "w2_neigh": _pad2(params["w2_neigh"], hid_pad, out_pad),
        "b2":       _pad2(params["b2"], 1, out_pad),
    }

    # Shared-weight SAGE applied to both feature sets on the same graph g.
    h_src = _rsage(pp, x1p, adj_t, tile_v=tile_v, mxu_dtype=mxu_dtype)  # (n_pad, out_pad)
    h_dst = _rsage(pp, x2p, adj_t, tile_v=tile_v, mxu_dtype=mxu_dtype)

    # HeteroDotProductPredictor (u_dot_v): trivial VPU reduce with an (E,1)
    # lane-1 output, kept in JAX glue per the performance review.
    pos_score = jnp.sum(h_src[pos_src] * h_dst[pos_dst], axis=-1, keepdims=True)
    neg_score = jnp.sum(h_src[neg_src] * h_dst[neg_dst], axis=-1, keepdims=True)

    # MLPPredictor on graph g: W2(relu(BN(W1(h_u * h_v)))).
    eps = jnp.float32(1e-5)
    bn_scale = params["bn_gamma"] / jnp.sqrt(params["bn_var"] + eps)
    bn_shift = params["bn_beta"] - params["bn_mean"] * bn_scale
    w1 = _pad2(params["mlp_w1"], out_pad, mlp_hid_pad)
    b1 = _pad2(params["mlp_b1"], 1, mlp_hid_pad)
    sc = _pad2(bn_scale[None, :], 1, mlp_hid_pad)
    sh = _pad2(bn_shift[None, :], 1, mlp_hid_pad)
    w2 = _pad2(params["mlp_w2"], mlp_hid_pad, cls_pad)
    b2 = _pad2(params["mlp_b2"], 1, cls_pad)

    e = g_src.shape[0]
    e_pad = _round_up(e, tile_e)
    hu = _pad2(h_src[g_src], e_pad, out_pad)   # gathers are JAX glue
    hv = _pad2(h_dst[g_dst], e_pad, out_pad)
    rating = edge_mlp(hu, hv, w1, b1, sc, sh, w2, b2,
                      tile_e=tile_e, mxu_dtype=mxu_dtype)
    rating = rating[:e, :n_cls]

    return pos_score, neg_score, rating


# ----------------------------------------------------------------------------
# Parameter init (matches the PyTorch module's shapes)
# ----------------------------------------------------------------------------
def init_params(key, in_feats, hid_feats, out_feats, mlp_hidden=30, mlp_classes=1):
    ks = jax.random.split(key, 6)
    s = 0.1
    return {
        # SAGEConv(in_feats, hid_feats, 'mean')
        "w1_self":  s * jax.random.normal(ks[0], (in_feats, hid_feats), jnp.float32),
        "w1_neigh": s * jax.random.normal(ks[1], (in_feats, hid_feats), jnp.float32),
        "b1":       jnp.zeros((1, hid_feats), jnp.float32),
        # SAGEConv(hid_feats, out_feats, 'mean')
        "w2_self":  s * jax.random.normal(ks[2], (hid_feats, out_feats), jnp.float32),
        "w2_neigh": s * jax.random.normal(ks[3], (hid_feats, out_feats), jnp.float32),
        "b2":       jnp.zeros((1, out_feats), jnp.float32),
        # MLPPredictor(out_feats, 30, 1)
        "mlp_w1":   s * jax.random.normal(ks[4], (out_feats, mlp_hidden), jnp.float32),
        "mlp_b1":   jnp.zeros((1, mlp_hidden), jnp.float32),
        "bn_gamma": jnp.ones((mlp_hidden,), jnp.float32),
        "bn_beta":  jnp.zeros((mlp_hidden,), jnp.float32),
        "bn_mean":  jnp.zeros((mlp_hidden,), jnp.float32),
        "bn_var":   jnp.ones((mlp_hidden,), jnp.float32),
        "mlp_w2":   s * jax.random.normal(ks[5], (mlp_hidden, mlp_classes), jnp.float32),
        "mlp_b2":   jnp.zeros((1, mlp_classes), jnp.float32),
    }


if __name__ == "__main__":
    key = jax.random.PRNGKey(0)
    N, in_f, hid_f, out_f = 16, 8, 16, 8

    # Deterministic graphs: g (message passing + rating edges), pos_g, neg_g.
    idx = jnp.arange(N, dtype=jnp.int32)
    g_src = jnp.concatenate([idx, idx])
    g_dst = jnp.concatenate([(idx * 3 + 1) % N, (idx * 5 + 2) % N])
    pos_src, pos_dst = g_src, g_dst
    neg_src = idx
    neg_dst = (idx * 7 + 3) % N

    adj = jnp.zeros((N, N), jnp.float32).at[g_src, g_dst].set(1.0)

    k1, k2, kp = jax.random.split(key, 3)
    x1 = jax.random.normal(k1, (N, in_f), jnp.float32)
    x2 = jax.random.normal(k2, (N, in_f), jnp.float32)
    params = init_params(kp, in_f, hid_f, out_f)

    # Small tiles so the tiny demo exercises a multi-step grid; use 128+ for real N.
    fwd = jax.jit(functools.partial(matchsage_forward, tile_v=8, tile_e=8))
    pos_score, neg_score, rating = fwd(params, x1, x2, adj, g_src, g_dst,
                                       pos_src, pos_dst, neg_src, neg_dst)
    jax.block_until_ready((pos_score, neg_score, rating))

    assert pos_score.shape == (2 * N, 1)
    assert neg_score.shape == (N, 1)
    assert rating.shape == (2 * N, 1)
    for t in (pos_score, neg_score, rating):
        assert bool(jnp.all(jnp.isfinite(t)))
    print("KERNEL_OK")
</pallas_src>

<mosaic_0001>
module attributes {stable_mosaic.version = 11 : i64} {
  func.func @_sage_layer_kernel(%arg0: i32, %arg1: memref<8x128xf32, #tpu.memory_space<vmem>>, %arg2: memref<16x128xf32, #tpu.memory_space<vmem>>, %arg3: memref<128x128xf32, #tpu.memory_space<vmem>>, %arg4: memref<128x128xf32, #tpu.memory_space<vmem>>, %arg5: memref<1x128xf32, #tpu.memory_space<vmem>>, %arg6: memref<8x16xf32, #tpu.memory_space<vmem>>, %arg7: memref<8x128xf32, #tpu.memory_space<vmem>>) attributes {dimension_semantics = [#tpu.dimension_semantics<parallel>], iteration_bounds = array<i64: 2>, scalar_prefetch = 0 : i64, scratch_operands = 0 : i64, tpu.core_type = #tpu.core_type<tc>, window_params = [{transform_indices = @transform_0, window_bounds = array<i64: 8, 128>}, {pipeline_mode = #tpu.pipeline_mode<synchronous>, transform_indices = @transform_1, window_bounds = array<i64: 16, 128>}, {pipeline_mode = #tpu.pipeline_mode<synchronous>, transform_indices = @transform_2, window_bounds = array<i64: 128, 128>}, {pipeline_mode = #tpu.pipeline_mode<synchronous>, transform_indices = @transform_3, window_bounds = array<i64: 128, 128>}, {pipeline_mode = #tpu.pipeline_mode<synchronous>, transform_indices = @transform_4, window_bounds = array<i64: 1, 128>}, {transform_indices = @transform_5, window_bounds = array<i64: 8, 16>}, {transform_indices = @transform_6, window_bounds = array<i64: 8, 128>}]} {
    %c0 = arith.constant 0 : index
    %c0_0 = arith.constant 0 : index
    %0 = vector.load %arg6[%c0, %c0_0] : memref<8x16xf32, #tpu.memory_space<vmem>>, vector<8x16xf32>
    %cst = arith.constant dense<0.000000e+00> : vector<8xf32>
    %1 = vector.multi_reduction <add>, %0, %cst [1] : vector<8x16xf32> to vector<8xf32>
    %2 = vector.shape_cast %1 : vector<8xf32> to vector<8x1xf32>
    %cst_1 = arith.constant 0.000000e+00 : f32
    %3 = vector.broadcast %cst_1 : f32 to vector<8x1xf32>
    %4 = arith.cmpf ogt, %2, %3 : vector<8x1xf32>
    %cst_2 = arith.constant 1.000000e+00 : f32
    %5 = vector.broadcast %cst_2 : f32 to vector<8x1xf32>
    %6 = arith.maximumf %2, %5 : vector<8x1xf32>
    %cst_3 = arith.constant 1.000000e+00 : f32
    %7 = vector.broadcast %cst_3 : f32 to vector<8x1xf32>
    %8 = arith.divf %7, %6 : vector<8x1xf32>
    %cst_4 = arith.constant 0.000000e+00 : f32
    %9 = vector.broadcast %cst_4 : f32 to vector<8x1xf32>
    %10 = arith.select %4, %8, %9 : vector<8x1xi1>, vector<8x1xf32>
    %11 = arith.truncf %0 : vector<8x16xf32> to vector<8x16xbf16>
    %c0_5 = arith.constant 0 : index
    %c0_6 = arith.constant 0 : index
    %12 = vector.load %arg2[%c0_5, %c0_6] : memref<16x128xf32, #tpu.memory_space<vmem>>, vector<16x128xf32>
    %13 = arith.truncf %12 : vector<16x128xf32> to vector<16x128xbf16>
    %cst_7 = arith.constant dense<0.000000e+00> : vector<8x128xf32>
    %14 = tpu.matmul %11, %13, %cst_7 {dimension_numbers = #tpu.dot_dimension_numbers<[1], [0], [0], [1], [0, 0, 1, 1], [], []>} : vector<8x16xbf16>, vector<16x128xbf16>, vector<8x128xf32> -> vector<8x128xf32>
    %15 = vector.broadcast %10 : vector<8x1xf32> to vector<8x128xf32>
    %16 = arith.mulf %14, %15 : vector<8x128xf32>
    %17 = arith.truncf %16 : vector<8x128xf32> to vector<8x128xbf16>
    %c0_8 = arith.constant 0 : index
    %c0_9 = arith.constant 0 : index
    %18 = vector.load %arg4[%c0_8, %c0_9] : memref<128x128xf32, #tpu.memory_space<vmem>>, vector<128x128xf32>
    %19 = arith.truncf %18 : vector<128x128xf32> to vector<128x128xbf16>
    %cst_10 = arith.constant dense<0.000000e+00> : vector<8x128xf32>
    %20 = tpu.matmul %17, %19, %cst_10 {dimension_numbers = #tpu.dot_dimension_numbers<[1], [0], [0], [1], [0, 0, 1, 1], [], []>} : vector<8x128xbf16>, vector<128x128xbf16>, vector<8x128xf32> -> vector<8x128xf32>
    %c0_11 = arith.constant 0 : index
    %c0_12 = arith.constant 0 : index
    %21 = vector.load %arg1[%c0_11, %c0_12] : memref<8x128xf32, #tpu.memory_space<vmem>>, vector<8x128xf32>
    %22 = arith.truncf %21 : vector<8x128xf32> to vector<8x128xbf16>
    %c0_13 = arith.constant 0 : index
    %c0_14 = arith.constant 0 : index
    %23 = vector.load %arg3[%c0_13, %c0_14] : memref<128x128xf32, #tpu.memory_space<vmem>>, vector<128x128xf32>
    %24 = arith.truncf %23 : vector<128x128xf32> to vector<128x128xbf16>
    %cst_15 = arith.constant dense<0.000000e+00> : vector<8x128xf32>
    %25 = tpu.matmul %22, %24, %cst_15 {dimension_numbers = #tpu.dot_dimension_numbers<[1], [0], [0], [1], [0, 0, 1, 1], [], []>} : vector<8x128xbf16>, vector<128x128xbf16>, vector<8x128xf32> -> vector<8x128xf32>
    %26 = arith.addf %25, %20 : vector<8x128xf32>
    %c0_16 = arith.constant 0 : index
    %c0_17 = arith.constant 0 : index
    %27 = vector.load %arg5[%c0_16, %c0_17] : memref<1x128xf32, #tpu.memory_space<vmem>>, vector<1x128xf32>
    %28 = vector.broadcast %27 : vector<1x128xf32> to vector<8x128xf32>
    %29 = arith.addf %26, %28 : vector<8x128xf32>
    %cst_18 = arith.constant 0.000000e+00 : f32
    %30 = vector.broadcast %cst_18 : f32 to vector<8x128xf32>
    %31 = arith.maximumf %29, %30 : vector<8x128xf32>
    %c0_19 = arith.constant 0 : index
    %c0_20 = arith.constant 0 : index
    %32 = vector.load %arg7[%c0_19, %c0_20] : memref<8x128xf32, #tpu.memory_space<vmem>>, vector<8x128xf32>
    tpu.vector_store %arg7[%c0_19, %c0_20], %31 {strides = array<i32>} : memref<8x128xf32, #tpu.memory_space<vmem>>, vector<8x128xf32>,
    return
  }
  func.func @transform_0(%arg0: i32) -> (i32, i32) {
    %c0_i32 = arith.constant 0 : i32
    %c0_i32_0 = arith.constant 0 : i32
    return %arg0, %c0_i32 : i32, i32
  }
  func.func @transform_1(%arg0: i32) -> (i32, i32) {
    %c0_i32 = arith.constant 0 : i32
    %c0_i32_0 = arith.constant 0 : i32
    %c0_i32_1 = arith.constant 0 : i32
    return %c0_i32, %c0_i32_0 : i32, i32
  }
  func.func @transform_2(%arg0: i32) -> (i32, i32) {
    %c0_i32 = arith.constant 0 : i32
    %c0_i32_0 = arith.constant 0 : i32
    %c0_i32_1 = arith.constant 0 : i32
    return %c0_i32, %c0_i32_0 : i32, i32
  }
  func.func @transform_3(%arg0: i32) -> (i32, i32) {
    %c0_i32 = arith.constant 0 : i32
    %c0_i32_0 = arith.constant 0 : i32
    %c0_i32_1 = arith.constant 0 : i32
    return %c0_i32, %c0_i32_0 : i32, i32
  }
  func.func @transform_4(%arg0: i32) -> (i32, i32) {
    %c0_i32 = arith.constant 0 : i32
    %c0_i32_0 = arith.constant 0 : i32
    %c0_i32_1 = arith.constant 0 : i32
    return %c0_i32, %c0_i32_0 : i32, i32
  }
  func.func @transform_5(%arg0: i32) -> (i32, i32) {
    %c0_i32 = arith.constant 0 : i32
    %c0_i32_0 = arith.constant 0 : i32
    return %arg0, %c0_i32 : i32, i32
  }
  func.func @transform_6(%arg0: i32) -> (i32, i32) {
    %c0_i32 = arith.constant 0 : i32
    %c0_i32_0 = arith.constant 0 : i32
    return %arg0, %c0_i32 : i32, i32
  }
}

module attributes {stable_mosaic.version = 11 : i64} {
  func.func @_sage_layer_kernel(%arg0: i32, %arg1: memref<8x128xf32, #tpu.memory_space<vmem>>, %arg2: memref<16x128xf32, #tpu.memory_space<vmem>>, %arg3: memref<128x128xf32, #tpu.memory_space<vmem>>, %arg4: memref<128x128xf32, #tpu.memory_space<vmem>>, %arg5: memref<1x128xf32, #tpu.memory_space<vmem>>, %arg6: memref<8x16xf32, #tpu.memory_space<vmem>>, %arg7: memref<8x128xf32, #tpu.memory_space<vmem>>) attributes {dimension_semantics = [#tpu.dimension_semantics<parallel>], iteration_bounds = array<i64: 2>, scalar_prefetch = 0 : i64, scratch_operands = 0 : i64, tpu.core_type = #tpu.core_type<tc>, window_params = [{transform_indices = @transform_0, window_bounds = array<i64: 8, 128>}, {pipeline_mode = #tpu.pipeline_mode<synchronous>, transform_indices = @transform_1, window_bounds = array<i64: 16, 128>}, {pipeline_mode = #tpu.pipeline_mode<synchronous>, transform_indices = @transform_2, window_bounds = array<i64: 128, 128>}, {pipeline_mode = #tpu.pipeline_mode<synchronous>, transform_indices = @transform_3, window_bounds = array<i64: 128, 128>}, {pipeline_mode = #tpu.pipeline_mode<synchronous>, transform_indices = @transform_4, window_bounds = array<i64: 1, 128>}, {transform_indices = @transform_5, window_bounds = array<i64: 8, 16>}, {transform_indices = @transform_6, window_bounds = array<i64: 8, 128>}]} {
    %c0 = arith.constant 0 : index
    %c0_0 = arith.constant 0 : index
    %0 = vector.load %arg6[%c0, %c0_0] : memref<8x16xf32, #tpu.memory_space<vmem>>, vector<8x16xf32>
    %cst = arith.constant dense<0.000000e+00> : vector<8xf32>
    %1 = vector.multi_reduction <add>, %0, %cst [1] : vector<8x16xf32> to vector<8xf32>
    %2 = vector.shape_cast %1 : vector<8xf32> to vector<8x1xf32>
    %cst_1 = arith.constant 0.000000e+00 : f32
    %3 = vector.broadcast %cst_1 : f32 to vector<8x1xf32>
    %4 = arith.cmpf ogt, %2, %3 : vector<8x1xf32>
    %cst_2 = arith.constant 1.000000e+00 : f32
    %5 = vector.broadcast %cst_2 : f32 to vector<8x1xf32>
    %6 = arith.maximumf %2, %5 : vector<8x1xf32>
    %cst_3 = arith.constant 1.000000e+00 : f32
    %7 = vector.broadcast %cst_3 : f32 to vector<8x1xf32>
    %8 = arith.divf %7, %6 : vector<8x1xf32>
    %cst_4 = arith.constant 0.000000e+00 : f32
    %9 = vector.broadcast %cst_4 : f32 to vector<8x1xf32>
    %10 = arith.select %4, %8, %9 : vector<8x1xi1>, vector<8x1xf32>
    %11 = arith.truncf %0 : vector<8x16xf32> to vector<8x16xbf16>
    %c0_5 = arith.constant 0 : index
    %c0_6 = arith.constant 0 : index
    %12 = vector.load %arg2[%c0_5, %c0_6] : memref<16x128xf32, #tpu.memory_space<vmem>>, vector<16x128xf32>
    %13 = arith.truncf %12 : vector<16x128xf32> to vector<16x128xbf16>
    %cst_7 = arith.constant dense<0.000000e+00> : vector<8x128xf32>
    %14 = tpu.matmul %11, %13, %cst_7 {dimension_numbers = #tpu.dot_dimension_numbers<[1], [0], [0], [1], [0, 0, 1, 1], [], []>} : vector<8x16xbf16>, vector<16x128xbf16>, vector<8x128xf32> -> vector<8x128xf32>
    %15 = vector.broadcast %10 : vector<8x1xf32> to vector<8x128xf32>
    %16 = arith.mulf %14, %15 : vector<8x128xf32>
    %17 = arith.truncf %16 : vector<8x128xf32> to vector<8x128xbf16>
    %c0_8 = arith.constant 0 : index
    %c0_9 = arith.constant 0 : index
    %18 = vector.load %arg4[%c0_8, %c0_9] : memref<128x128xf32, #tpu.memory_space<vmem>>, vector<128x128xf32>
    %19 = arith.truncf %18 : vector<128x128xf32> to vector<128x128xbf16>
    %cst_10 = arith.constant dense<0.000000e+00> : vector<8x128xf32>
    %20 = tpu.matmul %17, %19, %cst_10 {dimension_numbers = #tpu.dot_dimension_numbers<[1], [0], [0], [1], [0, 0, 1, 1], [], []>} : vector<8x128xbf16>, vector<128x128xbf16>, vector<8x128xf32> -> vector<8x128xf32>
    %c0_11 = arith.constant 0 : index
    %c0_12 = arith.constant 0 : index
    %21 = vector.load %arg1[%c0_11, %c0_12] : memref<8x128xf32, #tpu.memory_space<vmem>>, vector<8x128xf32>
    %22 = arith.truncf %21 : vector<8x128xf32> to vector<8x128xbf16>
    %c0_13 = arith.constant 0 : index
    %c0_14 = arith.constant 0 : index
    %23 = vector.load %arg3[%c0_13, %c0_14] : memref<128x128xf32, #tpu.memory_space<vmem>>, vector<128x128xf32>
    %24 = arith.truncf %23 : vector<128x128xf32> to vector<128x128xbf16>
    %cst_15 = arith.constant dense<0.000000e+00> : vector<8x128xf32>
    %25 = tpu.matmul %22, %24, %cst_15 {dimension_numbers = #tpu.dot_dimension_numbers<[1], [0], [0], [1], [0, 0, 1, 1], [], []>} : vector<8x128xbf16>, vector<128x128xbf16>, vector<8x128xf32> -> vector<8x128xf32>
    %26 = arith.addf %25, %20 : vector<8x128xf32>
    %c0_16 = arith.constant 0 : index
    %c0_17 = arith.constant 0 : index
    %27 = vector.load %arg5[%c0_16, %c0_17] : memref<1x128xf32, #tpu.memory_space<vmem>>, vector<1x128xf32>
    %28 = vector.broadcast %27 : vector<1x128xf32> to vector<8x128xf32>
    %29 = arith.addf %26, %28 : vector<8x128xf32>
    %c0_18 = arith.constant 0 : index
    %c0_19 = arith.constant 0 : index
    %30 = vector.load %arg7[%c0_18, %c0_19] : memref<8x128xf32, #tpu.memory_space<vmem>>, vector<8x128xf32>
    tpu.vector_store %arg7[%c0_18, %c0_19], %29 {strides = array<i32>} : memref<8x128xf32, #tpu.memory_space<vmem>>, vector<8x128xf32>,
    return
  }
  func.func @transform_0(%arg0: i32) -> (i32, i32) {
    %c0_i32 = arith.constant 0 : i32
    %c0_i32_0 = arith.constant 0 : i32
    return %arg0, %c0_i32 : i32, i32
  }
  func.func @transform_1(%arg0: i32) -> (i32, i32) {
    %c0_i32 = arith.constant 0 : i32
    %c0_i32_0 = arith.constant 0 : i32
    %c0_i32_1 = arith.constant 0 : i32
    return %c0_i32, %c0_i32_0 : i32, i32
  }
  func.func @transform_2(%arg0: i32) -> (i32, i32) {
    %c0_i32 = arith.constant 0 : i32
    %c0_i32_0 = arith.constant 0 : i32
    %c0_i32_1 = arith.constant 0 : i32
    return %c0_i32, %c0_i32_0 : i32, i32
  }
  func.func @transform_3(%arg0: i32) -> (i32, i32) {
    %c0_i32 = arith.constant 0 : i32
    %c0_i32_0 = arith.constant 0 : i32
    %c0_i32_1 = arith.constant 0 : i32
    return %c0_i32, %c0_i32_0 : i32, i32
  }
  func.func @transform_4(%arg0: i32) -> (i32, i32) {
    %c0_i32 = arith.constant 0 : i32
    %c0_i32_0 = arith.constant 0 : i32
    %c0_i32_1 = arith.constant 0 : i32
    return %c0_i32, %c0_i32_0 : i32, i32
  }
  func.func @transform_5(%arg0: i32) -> (i32, i32) {
    %c0_i32 = arith.constant 0 : i32
    %c0_i32_0 = arith.constant 0 : i32
    return %arg0, %c0_i32 : i32, i32
  }
  func.func @transform_6(%arg0: i32) -> (i32, i32) {
    %c0_i32 = arith.constant 0 : i32
    %c0_i32_0 = arith.constant 0 : i32
    return %arg0, %c0_i32 : i32, i32
  }
}

module attributes {stable_mosaic.version = 11 : i64} {
  func.func @_edge_mlp_kernel(%arg0: i32, %arg1: memref<8x128xf32, #tpu.memory_space<vmem>>, %arg2: memref<8x128xf32, #tpu.memory_space<vmem>>, %arg3: memref<128x128xf32, #tpu.memory_space<vmem>>, %arg4: memref<1x128xf32, #tpu.memory_space<vmem>>, %arg5: memref<1x128xf32, #tpu.memory_space<vmem>>, %arg6: memref<1x128xf32, #tpu.memory_space<vmem>>, %arg7: memref<128x128xf32, #tpu.memory_space<vmem>>, %arg8: memref<1x128xf32, #tpu.memory_space<vmem>>, %arg9: memref<8x128xf32, #tpu.memory_space<vmem>>) attributes {dimension_semantics = [#tpu.dimension_semantics<parallel>], iteration_bounds = array<i64: 4>, scalar_prefetch = 0 : i64, scratch_operands = 0 : i64, tpu.core_type = #tpu.core_type<tc>, window_params = [{transform_indices = @transform_0, window_bounds = array<i64: 8, 128>}, {transform_indices = @transform_1, window_bounds = array<i64: 8, 128>}, {pipeline_mode = #tpu.pipeline_mode<synchronous>, transform_indices = @transform_2, window_bounds = array<i64: 128, 128>}, {pipeline_mode = #tpu.pipeline_mode<synchronous>, transform_indices = @transform_3, window_bounds = array<i64: 1, 128>}, {pipeline_mode = #tpu.pipeline_mode<synchronous>, transform_indices = @transform_4, window_bounds = array<i64: 1, 128>}, {pipeline_mode = #tpu.pipeline_mode<synchronous>, transform_indices = @transform_5, window_bounds = array<i64: 1, 128>}, {pipeline_mode = #tpu.pipeline_mode<synchronous>, transform_indices = @transform_6, window_bounds = array<i64: 128, 128>}, {pipeline_mode = #tpu.pipeline_mode<synchronous>, transform_indices = @transform_7, window_bounds = array<i64: 1, 128>}, {transform_indices = @transform_8, window_bounds = array<i64: 8, 128>}]} {
    %c0 = arith.constant 0 : index
    %c0_0 = arith.constant 0 : index
    %0 = vector.load %arg1[%c0, %c0_0] : memref<8x128xf32, #tpu.memory_space<vmem>>, vector<8x128xf32>
    %c0_1 = arith.constant 0 : index
    %c0_2 = arith.constant 0 : index
    %1 = vector.load %arg2[%c0_1, %c0_2] : memref<8x128xf32, #tpu.memory_space<vmem>>, vector<8x128xf32>
    %2 = arith.mulf %0, %1 : vector<8x128xf32>
    %3 = arith.truncf %2 : vector<8x128xf32> to vector<8x128xbf16>
    %c0_3 = arith.constant 0 : index
    %c0_4 = arith.constant 0 : index
    %4 = vector.load %arg3[%c0_3, %c0_4] : memref<128x128xf32, #tpu.memory_space<vmem>>, vector<128x128xf32>
    %5 = arith.truncf %4 : vector<128x128xf32> to vector<128x128xbf16>
    %cst = arith.constant dense<0.000000e+00> : vector<8x128xf32>
    %6 = tpu.matmul %3, %5, %cst {dimension_numbers = #tpu.dot_dimension_numbers<[1], [0], [0], [1], [0, 0, 1, 1], [], []>} : vector<8x128xbf16>, vector<128x128xbf16>, vector<8x128xf32> -> vector<8x128xf32>
    %c0_5 = arith.constant 0 : index
    %c0_6 = arith.constant 0 : index
    %7 = vector.load %arg4[%c0_5, %c0_6] : memref<1x128xf32, #tpu.memory_space<vmem>>, vector<1x128xf32>
    %8 = vector.broadcast %7 : vector<1x128xf32> to vector<8x128xf32>
    %9 = arith.addf %6, %8 : vector<8x128xf32>
    %c0_7 = arith.constant 0 : index
    %c0_8 = arith.constant 0 : index
    %10 = vector.load %arg5[%c0_7, %c0_8] : memref<1x128xf32, #tpu.memory_space<vmem>>, vector<1x128xf32>
    %11 = vector.broadcast %10 : vector<1x128xf32> to vector<8x128xf32>
    %12 = arith.mulf %9, %11 : vector<8x128xf32>
    %c0_9 = arith.constant 0 : index
    %c0_10 = arith.constant 0 : index
    %13 = vector.load %arg6[%c0_9, %c0_10] : memref<1x128xf32, #tpu.memory_space<vmem>>, vector<1x128xf32>
    %14 = vector.broadcast %13 : vector<1x128xf32> to vector<8x128xf32>
    %15 = arith.addf %12, %14 : vector<8x128xf32>
    %cst_11 = arith.constant 0.000000e+00 : f32
    %16 = vector.broadcast %cst_11 : f32 to vector<8x128xf32>
    %17 = arith.maximumf %15, %16 : vector<8x128xf32>
    %18 = arith.truncf %17 : vector<8x128xf32> to vector<8x128xbf16>
    %c0_12 = arith.constant 0 : index
    %c0_13 = arith.constant 0 : index
    %19 = vector.load %arg7[%c0_12, %c0_13] : memref<128x128xf32, #tpu.memory_space<vmem>>, vector<128x128xf32>
    %20 = arith.truncf %19 : vector<128x128xf32> to vector<128x128xbf16>
    %cst_14 = arith.constant dense<0.000000e+00> : vector<8x128xf32>
    %21 = tpu.matmul %18, %20, %cst_14 {dimension_numbers = #tpu.dot_dimension_numbers<[1], [0], [0], [1], [0, 0, 1, 1], [], []>} : vector<8x128xbf16>, vector<128x128xbf16>, vector<8x128xf32> -> vector<8x128xf32>
    %c0_15 = arith.constant 0 : index
    %c0_16 = arith.constant 0 : index
    %22 = vector.load %arg8[%c0_15, %c0_16] : memref<1x128xf32, #tpu.memory_space<vmem>>, vector<1x128xf32>
    %23 = vector.broadcast %22 : vector<1x128xf32> to vector<8x128xf32>
    %24 = arith.addf %21, %23 : vector<8x128xf32>
    %c0_17 = arith.constant 0 : index
    %c0_18 = arith.constant 0 : index
    %25 = vector.load %arg9[%c0_17, %c0_18] : memref<8x128xf32, #tpu.memory_space<vmem>>, vector<8x128xf32>
    tpu.vector_store %arg9[%c0_17, %c0_18], %24 {strides = array<i32>} : memref<8x128xf32, #tpu.memory_space<vmem>>, vector<8x128xf32>,
    return
  }
  func.func @transform_0(%arg0: i32) -> (i32, i32) {
    %c0_i32 = arith.constant 0 : i32
    %c0_i32_0 = arith.constant 0 : i32
    return %arg0, %c0_i32 : i32, i32
  }
  func.func @transform_1(%arg0: i32) -> (i32, i32) {
    %c0_i32 = arith.constant 0 : i32
    %c0_i32_0 = arith.constant 0 : i32
    return %arg0, %c0_i32 : i32, i32
  }
  func.func @transform_2(%arg0: i32) -> (i32, i32) {
    %c0_i32 = arith.constant 0 : i32
    %c0_i32_0 = arith.constant 0 : i32
    %c0_i32_1 = arith.constant 0 : i32
    return %c0_i32, %c0_i32_0 : i32, i32
  }
  func.func @transform_3(%arg0: i32) -> (i32, i32) {
    %c0_i32 = arith.constant 0 : i32
    %c0_i32_0 = arith.constant 0 : i32
    %c0_i32_1 = arith.constant 0 : i32
    return %c0_i32, %c0_i32_0 : i32, i32
  }
  func.func @transform_4(%arg0: i32) -> (i32, i32) {
    %c0_i32 = arith.constant 0 : i32
    %c0_i32_0 = arith.constant 0 : i32
    %c0_i32_1 = arith.constant 0 : i32
    return %c0_i32, %c0_i32_0 : i32, i32
  }
  func.func @transform_5(%arg0: i32) -> (i32, i32) {
    %c0_i32 = arith.constant 0 : i32
    %c0_i32_0 = arith.constant 0 : i32
    %c0_i32_1 = arith.constant 0 : i32
    return %c0_i32, %c0_i32_0 : i32, i32
  }
  func.func @transform_6(%arg0: i32) -> (i32, i32) {
    %c0_i32 = arith.constant 0 : i32
    %c0_i32_0 = arith.constant 0 : i32
    %c0_i32_1 = arith.constant 0 : i32
    return %c0_i32, %c0_i32_0 : i32, i32
  }
  func.func @transform_7(%arg0: i32) -> (i32, i32) {
    %c0_i32 = arith.constant 0 : i32
    %c0_i32_0 = arith.constant 0 : i32
    %c0_i32_1 = arith.constant 0 : i32
    return %c0_i32, %c0_i32_0 : i32, i32
  }
  func.func @transform_8(%arg0: i32) -> (i32, i32) {
    %c0_i32 = arith.constant 0 : i32
    %c0_i32_0 = arith.constant 0 : i32
    return %arg0, %c0_i32 : i32, i32
  }
}

</mosaic_0001>

<bundles_post_ra>
// kernel: matchsage_forward.7
= control target key start
LH: loop header
LB: loop body
LE: loop exit
PB: predicated region body
PF: predicated region fallthrough
CT: control target
= control target key end

     0   :  { %s523_s21 = smov 0   ;;  %s655_s0 = inlined_call_operand.vmem [shape: f32[16,128], index: 0, kind: input, shape index: {}, may-alias: {0,1}]   ;;  %s656_s1 = inlined_call_operand.vmem [shape: f32[16,128], index: 1, kind: input, shape index: {}, may-alias: {0,1}]   ;;  %s657_s2 = inlined_call_operand.vmem [shape: f32[128,128], index: 2, kind: input, shape index: {}]   ;;  %s658_s3 = inlined_call_operand.vmem [shape: f32[128,128], index: 3, kind: input, shape index: {}]   ;;  %s659_s4 = inlined_call_operand.vmem [shape: f32[1,128], index: 4, kind: input, shape index: {}]   ;;  %s660_s5 = inlined_call_operand.vmem [shape: f32[16,16], index: 5, kind: input, shape index: {}]   ;;  %s661_s6 = inlined_call_operand.vmem [shape: f32[16,128], index: 6, kind: output, shape index: {}]  }
   0x1 LB: > { %s458_s22 = sadd.s32 4294967295, %s486_s21   ;;  %p462_p0 = scmp.ge.s32.totalorder %s486_s21, 1  ;;  %s486_s21 = sphi %s523_s21, %s16_s21  }
   0x2   : > { %p220_p1 = scmp.lt.s32.totalorder %s486_s21, 3 }
   0x4   : > { %p221_p2 = pnand %p462_p0, %p220_p1 }
   0x5   : > { %p252_p3 = scmp.lt.s32.totalorder (!%p221_p2), %s458_s22, 1 }
   0x6   : > { %224 = sbr.rel (%p221_p2) target bundleno = 291 (0x123), region = 44 }
   0xb   : > { %v289_v0 = vld [vmem:[%s656_s1] sm:$0xff]  ;;  %v290_v1 = vld [vmem:[%s656_s1 + $0x8] sm:$0xff]  ;;  %v363_v2 = vld [vmem:[%s657_s2 + $0x70] sm:$0xff]  ;;  %s663_s22 = smov (!%p252_p3, %s458_s22), 1  ;;  %vm266_vm0 = vcmask 130048  }
   0xc   : > { %v291_v3 = vpack.c.bf16 %v290_v1, %v289_v0  ;;  %v364_v4 = vld [vmem:[%s657_s2 + $0x78] sm:$0xff]  ;;  %v361_v5 = vld [vmem:[%s657_s2 + $0x60] sm:$0xff]  ;;  %v362_v6 = vld [vmem:[%s657_s2 + $0x68] sm:$0xff]  ;;  %s555_s15 = sshll.u32 %s663_s22, 3 }
   0xd   : > { %v372_v7 = vpack.c.bf16 %v364_v4, %v363_v2  ;;  %v324_v8 = vld [vmem:[%s658_s3 + $0x70] sm:$0xff]  ;;  %v325_v9 = vld [vmem:[%s658_s3 + $0x78] sm:$0xff]  ;;  %v371_v10 = vpack.c.bf16 %v362_v6, %v361_v5  ;;  %v322_v13 = vld [vmem:[%s658_s3 + $0x60] sm:$0xff]  ;;  %s259_s24 = scalar_lea.vmem %s660_s5, %s555_s15  ;;  %s255_s12 = scalar_lea.vmem %s655_s0, %s555_s15 }
   0xe   : > { %302 = vmatpush.bf16.msra.mxu0 %v291_v3  ;;  %v359_v11 = vld [vmem:[%s657_s2 + $0x50] sm:$0xff]  ;;  %v333_v12 = vpack.c.bf16 %v325_v9, %v324_v8  ;;  %v360_v14 = vld [vmem:[%s657_s2 + $0x58] sm:$0xff]  ;;  %v323_v15 = vld [vmem:[%s658_s3 + $0x68] sm:$0xff]  ;;  %s263_s11 = scalar_lea.vmem %s661_s6, %s555_s15 }
   0xf   : > { %373 = vmatpush.bf16.msra.mxu2 %v372_v7  ;;  %v265_v16 = vld [vmem:[%s259_s24] sm:$0xff]  ;;  %v332_v17 = vpack.c.bf16 %v323_v15, %v322_v13  ;;  %v370_v20 = vpack.c.bf16 %v360_v14, %v359_v11  ;;  %v358_v22 = vld [vmem:[%s657_s2 + $0x48] sm:$0xff]  ;;  %v355_v24 = vld [vmem:[%s657_s2 + $0x30] sm:$0xff] }
  0x10   : > { %334 = vmatpush.bf16.msra.mxu1 %v333_v12  ;;  %v267_v18 = vsel %vm266_vm0, %v265_v16, 0.0  ;;  %v288_v19 = vpack.c.bf16 %v265_v16, %v265_v16  ;;  %v357_v21 = vld [vmem:[%s657_s2 + $0x40] sm:$0xff]  ;;  %v356_v25 = vld [vmem:[%s657_s2 + $0x38] sm:$0xff]  ;;  %v354_v28 = vld [vmem:[%s657_s2 + $0x28] sm:$0xff] }
  0x11   : > { %268 = vadd.xlane.f32.xlu0 %v267_v18  ;;  %v369_v23 = vpack.c.bf16 %v358_v22, %v357_v21  ;;  %v368_v26 = vpack.c.bf16 %v356_v25, %v355_v24  ;;  %v353_v27 = vld [vmem:[%s657_s2 + $0x20] sm:$0xff]  ;;  %v320_v30 = vld [vmem:[%s658_s3 + $0x50] sm:$0xff]  ;;  %v321_v31 = vld [vmem:[%s658_s3 + $0x58] sm:$0xff] }
  0x12   : > { %466 = vmatmul.msk.bf16.vlgmr.msra.gmra.mxu0 %vm266_vm0, %v288_v19  ;;  %v367_v29 = vpack.c.bf16 %v354_v28, %v353_v27  ;;  %v331_v32 = vpack.c.bf16 %v321_v31, %v320_v30  ;;  %v351_v33 = vld [vmem:[%s657_s2 + $0x10] sm:$0xff]  ;;  %v352_v34 = vld [vmem:[%s657_s2 + $0x18] sm:$0xff]  ;;  %v318_v36 = vld [vmem:[%s658_s3 + $0x40] sm:$0xff] }
  0x13   : > { %374 = vmatpush.bf16.msra.mxu2 %v371_v10  ;;  %v366_v35 = vpack.c.bf16 %v352_v34, %v351_v33  ;;  %v319_v37 = vld [vmem:[%s658_s3 + $0x48] sm:$0xff]  ;;  %v349_v39 = vld [vmem:[%s657_s2] sm:$0xff]  ;;  %v316_v42 = vld [vmem:[%s658_s3 + $0x30] sm:$0xff] }
  0x14   : > { %335 = vmatpush.bf16.msra.mxu1 %v332_v17  ;;  %v330_v38 = vpack.c.bf16 %v319_v37, %v318_v36  ;;  %v350_v40 = vld [vmem:[%s657_s2 + $0x8] sm:$0xff]  ;;  %v317_v43 = vld [vmem:[%s658_s3 + $0x38] sm:$0xff]  ;;  %v347_v45 = vld [vmem:[%s255_s12] sm:$0xff] }
  0x15   : > { %v365_v41 = vpack.c.bf16 %v350_v40, %v349_v39  ;;  %v329_v44 = vpack.c.bf16 %v317_v43, %v316_v42  ;;  %v348_v46 = vpack.c.bf16 %v347_v45, %v347_v45  ;;  %v314_v47 = vld [vmem:[%s658_s3 + $0x20] sm:$0xff]  ;;  %v315_v48 = vld [vmem:[%s658_s3 + $0x28] sm:$0xff]  ;;  %v312_v50 = vld [vmem:[%s658_s3 + $0x10] sm:$0xff] }
  0x16   : > { %v328_v49 = vpack.c.bf16 %v315_v48, %v314_v47  ;;  %v313_v51 = vld [vmem:[%s658_s3 + $0x18] sm:$0xff]  ;;  %v310_v53 = vld [vmem:[%s658_s3] sm:$0xff]  ;;  %v311_v54 = vld [vmem:[%s658_s3 + $0x8] sm:$0xff] }
  0x17   : > { %375 = vmatpush.bf16.msra.mxu2 %v370_v20  ;;  %v327_v52 = vpack.c.bf16 %v313_v51, %v312_v50  ;;  %v326_v55 = vpack.c.bf16 %v311_v54, %v310_v53  ;;  %v477_v11 = vld [vmem:[%s659_s4] ss:$0 sm:$0xff] }
  0x18   : > { %336 = vmatpush.bf16.msra.mxu1 %v331_v32 }
  0x1b   : > { %376 = vmatpush.bf16.msra.mxu2 %v369_v23 }
  0x1c   : > { %337 = vmatpush.bf16.msra.mxu1 %v330_v38 }
  0x1f   : > { %377 = vmatpush.bf16.msra.mxu2 %v368_v26 }
  0x20   : > { %338 = vmatpush.bf16.msra.mxu1 %v329_v44 }
  0x23   : > { %378 = vmatpush.bf16.msra.mxu2 %v367_v29 }
  0x24   : > { %339 = vmatpush.bf16.msra.mxu1 %v328_v49 }
  0x27   : > { %379 = vmatpush.bf16.msra.mxu2 %v366_v35 }
  0x28   : > { %340 = vmatpush.bf16.msra.mxu1 %v327_v52 }
  0x2b   : > { %380 = vmatpush.bf16.msra.mxu2 %v365_v41 }
  0x2c   : > { %341 = vmatpush.bf16.msra.mxu1 %v326_v55 }
  0x2e   : > { %381 = vmatmul.bf16.vlgmr.msra.gmra.mxu2 %v348_v46 }
  0x84   : > { %v269_v56 = vpop.xlane.xlu0 %268 }
  0x85   : > { %v271_v57 = vmax.f32 %v269_v56, 1.0  ;;  %vm270_vm5 = vcmp.gt.f32.partialorder %v269_v56, 0.0 }
  0x87   : > { %478 = vrcp.f32 %v271_v57  ;;  %v283_v62 = vand.u32 2147483648, %v271_v57  ;;  %v281_v0 = vand.u32 2147483647, %v271_v57  ;;  %vm277_vm2 = vweird.f32 %v271_v57 }
  0x89   : > { %v284_v2 = vor.u32 1.1754944e-38, %v283_v62  ;;  %vm282_vm4 = vcmp.eq.f32.partialorder %v281_v0, 8.507059e+37 }
  0x8d   : > { %v479_v58 = vpop.eup %478 }
  0x8e   : > { %v273_v59 = vmul.f32 %v479_v58, %v271_v57  ;;  %vm278_vm1 = vweird.f32 %v479_v58 }
  0x8f   : > { %v304_v60 = vpop.f32.mrf.mxu0  ;;  %vm279_vm3 = vmor %vm277_vm2, %vm278_vm1 }
  0x90   : > { %v274_v61 = vsub.f32 1.0, %v273_v59 }
  0x92   : > { %v275_v63 = vmul.f32 %v479_v58, %v274_v61 }
  0x94   : > { %v276_v1 = vadd.f32 %v479_v58, %v275_v63 }
  0x96   : > { %v280_v3 = vsel %vm279_vm3, %v479_v58, %v276_v1 }
  0x97   : > { %v285_v4 = vsel %vm282_vm4, %v284_v2, %v280_v3  ;;  %v306_v5 = vpop.f32.mrf.mxu0 }
  0x98   : > { %v287_v6 = vsel %vm270_vm5, %v285_v4, 0.0 }
  0x99   : > { %v308_v7 = vmul.f32 %v304_v60, %v287_v6 }
  0x9b   : > { %v309_v8 = vpack.c.bf16 %v308_v7, %v308_v7 }
  0x9d   : > { %342 = vmatmul.bf16.vlgmr.msra.gmra.mxu1 %v309_v8 }
  0xb1   : > { %v382_v9 = vpop.f32.mrf.mxu2 }
  0xb9   : > { %v384_v10 = vpop.f32.mrf.mxu2 }
 0x11a   : > { %v343_v12 = vpop.f32.mrf.mxu1 }
 0x11b   : > { %v383_v13 = vadd.f32 %v382_v9, %v343_v12 }
 0x11d   : > { %v390_v14 = vadd.f32 %v477_v11, %v383_v13 }
 0x11f   : > { %v391_v15 = vmax.f32 %v390_v14, 0.0 }
 0x121   : > { %392 = vst [vmem:[%s263_s11] sm:$0xff] %v391_v15 }
 0x122   : > { %v345_v16 = vpop.f32.mrf.mxu1 }
 0x123 PF: > { %s16_s21 = sadd.s32 1, %s486_s21  }
 0x124   : > { %p13_p4 = scmp.ge.s32.totalorder %s16_s21, 4  }
 0x126   :  { %15 = sbr.rel (!%p13_p4) target bundleno = 1 (0x1), region = 77 }

// kernel: matchsage_forward.8
= control target key start
LH: loop header
LB: loop body
LE: loop exit
PB: predicated region body
PF: predicated region fallthrough
CT: control target
= control target key end

     0   :  { %s522_s21 = smov 0   ;;  %s654_s0 = inlined_call_operand.vmem [shape: f32[16,128], index: 0, kind: input, shape index: {}, may-alias: {0,1}]   ;;  %s655_s1 = inlined_call_operand.vmem [shape: f32[16,128], index: 1, kind: input, shape index: {}, may-alias: {0,1}]   ;;  %s656_s2 = inlined_call_operand.vmem [shape: f32[128,128], index: 2, kind: input, shape index: {}]   ;;  %s657_s3 = inlined_call_operand.vmem [shape: f32[128,128], index: 3, kind: input, shape index: {}]   ;;  %s658_s4 = inlined_call_operand.vmem [shape: f32[1,128], index: 4, kind: input, shape index: {}]   ;;  %s659_s5 = inlined_call_operand.vmem [shape: f32[16,16], index: 5, kind: input, shape index: {}]   ;;  %s660_s6 = inlined_call_operand.vmem [shape: f32[16,128], index: 6, kind: output, shape index: {}]  }
   0x1 LB: > { %s457_s22 = sadd.s32 4294967295, %s485_s21   ;;  %p461_p0 = scmp.ge.s32.totalorder %s485_s21, 1  ;;  %s485_s21 = sphi %s522_s21, %s16_s21  }
   0x2   : > { %p220_p1 = scmp.lt.s32.totalorder %s485_s21, 3 }
   0x4   : > { %p221_p2 = pnand %p461_p0, %p220_p1 }
   0x5   : > { %p252_p3 = scmp.lt.s32.totalorder (!%p221_p2), %s457_s22, 1 }
   0x6   : > { %224 = sbr.rel (%p221_p2) target bundleno = 291 (0x123), region = 44 }
   0xb   : > { %v289_v0 = vld [vmem:[%s655_s1] sm:$0xff]  ;;  %v290_v1 = vld [vmem:[%s655_s1 + $0x8] sm:$0xff]  ;;  %v363_v2 = vld [vmem:[%s656_s2 + $0x70] sm:$0xff]  ;;  %s662_s22 = smov (!%p252_p3, %s457_s22), 1  ;;  %vm266_vm0 = vcmask 130048  }
   0xc   : > { %v291_v3 = vpack.c.bf16 %v290_v1, %v289_v0  ;;  %v364_v4 = vld [vmem:[%s656_s2 + $0x78] sm:$0xff]  ;;  %v361_v5 = vld [vmem:[%s656_s2 + $0x60] sm:$0xff]  ;;  %v362_v6 = vld [vmem:[%s656_s2 + $0x68] sm:$0xff]  ;;  %s554_s15 = sshll.u32 %s662_s22, 3 }
   0xd   : > { %v372_v7 = vpack.c.bf16 %v364_v4, %v363_v2  ;;  %v324_v8 = vld [vmem:[%s657_s3 + $0x70] sm:$0xff]  ;;  %v325_v9 = vld [vmem:[%s657_s3 + $0x78] sm:$0xff]  ;;  %v371_v10 = vpack.c.bf16 %v362_v6, %v361_v5  ;;  %v322_v13 = vld [vmem:[%s657_s3 + $0x60] sm:$0xff]  ;;  %s259_s24 = scalar_lea.vmem %s659_s5, %s554_s15  ;;  %s255_s12 = scalar_lea.vmem %s654_s0, %s554_s15 }
   0xe   : > { %302 = vmatpush.bf16.msra.mxu0 %v291_v3  ;;  %v359_v11 = vld [vmem:[%s656_s2 + $0x50] sm:$0xff]  ;;  %v333_v12 = vpack.c.bf16 %v325_v9, %v324_v8  ;;  %v360_v14 = vld [vmem:[%s656_s2 + $0x58] sm:$0xff]  ;;  %v323_v15 = vld [vmem:[%s657_s3 + $0x68] sm:$0xff]  ;;  %s263_s11 = scalar_lea.vmem %s660_s6, %s554_s15 }
   0xf   : > { %373 = vmatpush.bf16.msra.mxu2 %v372_v7  ;;  %v265_v16 = vld [vmem:[%s259_s24] sm:$0xff]  ;;  %v332_v17 = vpack.c.bf16 %v323_v15, %v322_v13  ;;  %v370_v20 = vpack.c.bf16 %v360_v14, %v359_v11  ;;  %v358_v22 = vld [vmem:[%s656_s2 + $0x48] sm:$0xff]  ;;  %v355_v24 = vld [vmem:[%s656_s2 + $0x30] sm:$0xff] }
  0x10   : > { %334 = vmatpush.bf16.msra.mxu1 %v333_v12  ;;  %v267_v18 = vsel %vm266_vm0, %v265_v16, 0.0  ;;  %v288_v19 = vpack.c.bf16 %v265_v16, %v265_v16  ;;  %v357_v21 = vld [vmem:[%s656_s2 + $0x40] sm:$0xff]  ;;  %v356_v25 = vld [vmem:[%s656_s2 + $0x38] sm:$0xff]  ;;  %v354_v28 = vld [vmem:[%s656_s2 + $0x28] sm:$0xff] }
  0x11   : > { %268 = vadd.xlane.f32.xlu0 %v267_v18  ;;  %v369_v23 = vpack.c.bf16 %v358_v22, %v357_v21  ;;  %v368_v26 = vpack.c.bf16 %v356_v25, %v355_v24  ;;  %v353_v27 = vld [vmem:[%s656_s2 + $0x20] sm:$0xff]  ;;  %v320_v30 = vld [vmem:[%s657_s3 + $0x50] sm:$0xff]  ;;  %v321_v31 = vld [vmem:[%s657_s3 + $0x58] sm:$0xff] }
  0x12   : > { %465 = vmatmul.msk.bf16.vlgmr.msra.gmra.mxu0 %vm266_vm0, %v288_v19  ;;  %v367_v29 = vpack.c.bf16 %v354_v28, %v353_v27  ;;  %v331_v32 = vpack.c.bf16 %v321_v31, %v320_v30  ;;  %v351_v33 = vld [vmem:[%s656_s2 + $0x10] sm:$0xff]  ;;  %v352_v34 = vld [vmem:[%s656_s2 + $0x18] sm:$0xff]  ;;  %v318_v36 = vld [vmem:[%s657_s3 + $0x40] sm:$0xff] }
  0x13   : > { %374 = vmatpush.bf16.msra.mxu2 %v371_v10  ;;  %v366_v35 = vpack.c.bf16 %v352_v34, %v351_v33  ;;  %v319_v37 = vld [vmem:[%s657_s3 + $0x48] sm:$0xff]  ;;  %v349_v39 = vld [vmem:[%s656_s2] sm:$0xff]  ;;  %v316_v42 = vld [vmem:[%s657_s3 + $0x30] sm:$0xff] }
  0x14   : > { %335 = vmatpush.bf16.msra.mxu1 %v332_v17  ;;  %v330_v38 = vpack.c.bf16 %v319_v37, %v318_v36  ;;  %v350_v40 = vld [vmem:[%s656_s2 + $0x8] sm:$0xff]  ;;  %v317_v43 = vld [vmem:[%s657_s3 + $0x38] sm:$0xff]  ;;  %v347_v45 = vld [vmem:[%s255_s12] sm:$0xff] }
  0x15   : > { %v365_v41 = vpack.c.bf16 %v350_v40, %v349_v39  ;;  %v329_v44 = vpack.c.bf16 %v317_v43, %v316_v42  ;;  %v348_v46 = vpack.c.bf16 %v347_v45, %v347_v45  ;;  %v314_v47 = vld [vmem:[%s657_s3 + $0x20] sm:$0xff]  ;;  %v315_v48 = vld [vmem:[%s657_s3 + $0x28] sm:$0xff]  ;;  %v312_v50 = vld [vmem:[%s657_s3 + $0x10] sm:$0xff] }
  0x16   : > { %v328_v49 = vpack.c.bf16 %v315_v48, %v314_v47  ;;  %v313_v51 = vld [vmem:[%s657_s3 + $0x18] sm:$0xff]  ;;  %v310_v53 = vld [vmem:[%s657_s3] sm:$0xff]  ;;  %v311_v54 = vld [vmem:[%s657_s3 + $0x8] sm:$0xff] }
  0x17   : > { %375 = vmatpush.bf16.msra.mxu2 %v370_v20  ;;  %v327_v52 = vpack.c.bf16 %v313_v51, %v312_v50  ;;  %v326_v55 = vpack.c.bf16 %v311_v54, %v310_v53  ;;  %v476_v11 = vld [vmem:[%s658_s4] ss:$0 sm:$0xff] }
  0x18   : > { %336 = vmatpush.bf16.msra.mxu1 %v331_v32 }
  0x1b   : > { %376 = vmatpush.bf16.msra.mxu2 %v369_v23 }
  0x1c   : > { %337 = vmatpush.bf16.msra.mxu1 %v330_v38 }
  0x1f   : > { %377 = vmatpush.bf16.msra.mxu2 %v368_v26 }
  0x20   : > { %338 = vmatpush.bf16.msra.mxu1 %v329_v44 }
  0x23   : > { %378 = vmatpush.bf16.msra.mxu2 %v367_v29 }
  0x24   : > { %339 = vmatpush.bf16.msra.mxu1 %v328_v49 }
  0x27   : > { %379 = vmatpush.bf16.msra.mxu2 %v366_v35 }
  0x28   : > { %340 = vmatpush.bf16.msra.mxu1 %v327_v52 }
  0x2b   : > { %380 = vmatpush.bf16.msra.mxu2 %v365_v41 }
  0x2c   : > { %341 = vmatpush.bf16.msra.mxu1 %v326_v55 }
  0x2e   : > { %381 = vmatmul.bf16.vlgmr.msra.gmra.mxu2 %v348_v46 }
  0x84   : > { %v269_v56 = vpop.xlane.xlu0 %268 }
  0x85   : > { %v271_v57 = vmax.f32 %v269_v56, 1.0  ;;  %vm270_vm5 = vcmp.gt.f32.partialorder %v269_v56, 0.0 }
  0x87   : > { %477 = vrcp.f32 %v271_v57  ;;  %v283_v62 = vand.u32 2147483648, %v271_v57  ;;  %v281_v0 = vand.u32 2147483647, %v271_v57  ;;  %vm277_vm2 = vweird.f32 %v271_v57 }
  0x89   : > { %v284_v2 = vor.u32 1.1754944e-38, %v283_v62  ;;  %vm282_vm4 = vcmp.eq.f32.partialorder %v281_v0, 8.507059e+37 }
  0x8d   : > { %v478_v58 = vpop.eup %477 }
  0x8e   : > { %v273_v59 = vmul.f32 %v478_v58, %v271_v57  ;;  %vm278_vm1 = vweird.f32 %v478_v58 }
  0x8f   : > { %v304_v60 = vpop.f32.mrf.mxu0  ;;  %vm279_vm3 = vmor %vm277_vm2, %vm278_vm1 }
  0x90   : > { %v274_v61 = vsub.f32 1.0, %v273_v59 }
  0x92   : > { %v275_v63 = vmul.f32 %v478_v58, %v274_v61 }
  0x94   : > { %v276_v1 = vadd.f32 %v478_v58, %v275_v63 }
  0x96   : > { %v280_v3 = vsel %vm279_vm3, %v478_v58, %v276_v1 }
  0x97   : > { %v285_v4 = vsel %vm282_vm4, %v284_v2, %v280_v3  ;;  %v306_v5 = vpop.f32.mrf.mxu0 }
  0x98   : > { %v287_v6 = vsel %vm270_vm5, %v285_v4, 0.0 }
  0x99   : > { %v308_v7 = vmul.f32 %v304_v60, %v287_v6 }
  0x9b   : > { %v309_v8 = vpack.c.bf16 %v308_v7, %v308_v7 }
  0x9d   : > { %342 = vmatmul.bf16.vlgmr.msra.gmra.mxu1 %v309_v8 }
  0xb1   : > { %v382_v9 = vpop.f32.mrf.mxu2 }
  0xb9   : > { %v384_v10 = vpop.f32.mrf.mxu2 }
 0x11a   : > { %v343_v12 = vpop.f32.mrf.mxu1 }
 0x11b   : > { %v383_v13 = vadd.f32 %v382_v9, %v343_v12 }
 0x11d   : > { %v390_v14 = vadd.f32 %v476_v11, %v383_v13 }
 0x11f   : > { %391 = vst [vmem:[%s263_s11] sm:$0xff] %v390_v14 }
 0x122   : > { %v345_v15 = vpop.f32.mrf.mxu1 }
 0x123 PF: > { %s16_s21 = sadd.s32 1, %s485_s21  }
 0x124   : > { %p13_p4 = scmp.ge.s32.totalorder %s16_s21, 4  }
 0x126   :  { %15 = sbr.rel (!%p13_p4) target bundleno = 1 (0x1), region = 77 }

// kernel: matchsage_forward.9
= control target key start
LH: loop header
LB: loop body
LE: loop exit
PB: predicated region body
PF: predicated region fallthrough
CT: control target
= control target key end

     0   :  { %s557_s27 = smov 0   ;;  %s694_s0 = inlined_call_operand.vmem [shape: f32[32,128], index: 0, kind: input, shape index: {}]   ;;  %s695_s1 = inlined_call_operand.vmem [shape: f32[32,128], index: 1, kind: input, shape index: {}]   ;;  %s696_s2 = inlined_call_operand.vmem [shape: f32[128,128], index: 2, kind: input, shape index: {}]   ;;  %s697_s3 = inlined_call_operand.vmem [shape: f32[1,128], index: 3, kind: input, shape index: {}]   ;;  %s698_s4 = inlined_call_operand.vmem [shape: f32[1,128], index: 4, kind: input, shape index: {}]   ;;  %s699_s5 = inlined_call_operand.vmem [shape: f32[1,128], index: 5, kind: input, shape index: {}]   ;;  %s700_s6 = inlined_call_operand.vmem [shape: f32[128,128], index: 6, kind: input, shape index: {}]   ;;  %s701_s7 = inlined_call_operand.vmem [shape: f32[1,128], index: 7, kind: input, shape index: {}]   ;;  %s702_s8 = inlined_call_operand.vmem [shape: f32[32,128], index: 8, kind: output, shape index: {}]  }
   0x1 LB: > { %s482_s28 = sadd.s32 4294967295, %s510_s27   ;;  %p486_p0 = scmp.ge.s32.totalorder %s510_s27, 1  ;;  %s510_s27 = sphi %s557_s27, %s18_s27  }
   0x2   : > { %p270_p1 = scmp.lt.s32.totalorder %s510_s27, 5 }
   0x4   : > { %p271_p2 = pnand %p486_p0, %p270_p1 }
   0x5   : > { %p306_p3 = scmp.lt.s32.totalorder (!%p271_p2), %s482_s28, 3 }
   0x6   : > { %274 = sbr.rel (%p271_p2) target bundleno = 315 (0x13b), region = 52 }
   0xb   : > { %v336_v0 = vld [vmem:[%s696_s2 + $0x70] sm:$0xff]  ;;  %v337_v1 = vld [vmem:[%s696_s2 + $0x78] sm:$0xff]  ;;  %v334_v2 = vld [vmem:[%s696_s2 + $0x60] sm:$0xff]  ;;  %s704_s28 = smov (!%p306_p3, %s482_s28), 3 }
   0xc   : > { %v345_v3 = vpack.c.bf16 %v337_v1, %v336_v0  ;;  %v335_v4 = vld [vmem:[%s696_s2 + $0x68] sm:$0xff]  ;;  %v332_v6 = vld [vmem:[%s696_s2 + $0x50] sm:$0xff]  ;;  %v333_v7 = vld [vmem:[%s696_s2 + $0x58] sm:$0xff]  ;;  %s629_s29 = sshll.u32 %s704_s28, 3 }
   0xd   : > { %v344_v5 = vpack.c.bf16 %v335_v4, %v334_v2  ;;  %v389_v8 = vld [vmem:[%s700_s6 + $0x70] sm:$0xff]  ;;  %v390_v9 = vld [vmem:[%s700_s6 + $0x78] sm:$0xff]  ;;  %v387_v11 = vld [vmem:[%s700_s6 + $0x60] sm:$0xff]  ;;  %v343_v12 = vpack.c.bf16 %v333_v7, %v332_v6  ;;  %s309_s17 = scalar_lea.vmem %s694_s0, %s629_s29  ;;  %s313_s20 = scalar_lea.vmem %s695_s1, %s629_s29 }
   0xe   : > { %350 = vmatpush.bf16.msra.mxu0 %v345_v3  ;;  %v398_v10 = vpack.c.bf16 %v390_v9, %v389_v8  ;;  %v388_v13 = vld [vmem:[%s700_s6 + $0x68] sm:$0xff]  ;;  %v330_v14 = vld [vmem:[%s696_s2 + $0x40] sm:$0xff]  ;;  %v385_v17 = vld [vmem:[%s700_s6 + $0x50] sm:$0xff]  ;;  %s317_s30 = scalar_lea.vmem %s702_s8, %s629_s29 }
   0xf   : > { %v331_v15 = vld [vmem:[%s696_s2 + $0x48] sm:$0xff]  ;;  %v397_v16 = vpack.c.bf16 %v388_v13, %v387_v11  ;;  %v386_v18 = vld [vmem:[%s700_s6 + $0x58] sm:$0xff]  ;;  %v328_v20 = vld [vmem:[%s696_s2 + $0x30] sm:$0xff] }
  0x10   : > { %403 = vmatpush.bf16.msra.mxu1 %v398_v10  ;;  %v342_v19 = vpack.c.bf16 %v331_v15, %v330_v14  ;;  %v329_v21 = vld [vmem:[%s696_s2 + $0x38] sm:$0xff]  ;;  %v396_v22 = vpack.c.bf16 %v386_v18, %v385_v17  ;;  %v383_v23 = vld [vmem:[%s700_s6 + $0x40] sm:$0xff]  ;;  %v384_v24 = vld [vmem:[%s700_s6 + $0x48] sm:$0xff] }
  0x11   : > { %v341_v25 = vpack.c.bf16 %v329_v21, %v328_v20  ;;  %v326_v26 = vld [vmem:[%s696_s2 + $0x20] sm:$0xff]  ;;  %v327_v27 = vld [vmem:[%s696_s2 + $0x28] sm:$0xff]  ;;  %v395_v28 = vpack.c.bf16 %v384_v24, %v383_v23  ;;  %v381_v29 = vld [vmem:[%s700_s6 + $0x30] sm:$0xff] }
  0x12   : > { %351 = vmatpush.bf16.msra.mxu0 %v344_v5  ;;  %v382_v30 = vld [vmem:[%s700_s6 + $0x38] sm:$0xff]  ;;  %v340_v31 = vpack.c.bf16 %v327_v27, %v326_v26  ;;  %v324_v32 = vld [vmem:[%s696_s2 + $0x10] sm:$0xff]  ;;  %v318_v36 = vld [vmem:[%s309_s17] sm:$0xff] }
  0x13   : > { %v325_v33 = vld [vmem:[%s696_s2 + $0x18] sm:$0xff]  ;;  %v394_v34 = vpack.c.bf16 %v382_v30, %v381_v29  ;;  %v319_v37 = vld [vmem:[%s313_s20] sm:$0xff]  ;;  %v323_v39 = vld [vmem:[%s696_s2 + $0x8] sm:$0xff] }
  0x14   : > { %404 = vmatpush.bf16.msra.mxu1 %v397_v16  ;;  %v339_v35 = vpack.c.bf16 %v325_v33, %v324_v32  ;;  %v322_v38 = vld [vmem:[%s696_s2] sm:$0xff]  ;;  %v320_v40 = vmul.f32 %v319_v37, %v318_v36  ;;  %v380_v44 = vld [vmem:[%s700_s6 + $0x28] sm:$0xff]  ;;  %v377_v46 = vld [vmem:[%s700_s6 + $0x10] sm:$0xff] }
  0x15   : > { %v338_v41 = vpack.c.bf16 %v323_v39, %v322_v38  ;;  %v379_v43 = vld [vmem:[%s700_s6 + $0x20] sm:$0xff]  ;;  %v378_v47 = vld [vmem:[%s700_s6 + $0x18] sm:$0xff]  ;;  %v376_v50 = vld [vmem:[%s700_s6 + $0x8] sm:$0xff] }
  0x16   : > { %352 = vmatpush.bf16.msra.mxu0 %v343_v12  ;;  %v321_v42 = vpack.c.bf16 %v320_v40, %v320_v40  ;;  %v393_v45 = vpack.c.bf16 %v380_v44, %v379_v43  ;;  %v392_v48 = vpack.c.bf16 %v378_v47, %v377_v46  ;;  %v375_v49 = vld [vmem:[%s700_s6] sm:$0xff] }
  0x17   : > { %v391_v51 = vpack.c.bf16 %v376_v50, %v375_v49  ;;  %v500_v52 = vld [vmem:[%s697_s3] ss:$0 sm:$0xff] }
  0x18   : > { %405 = vmatpush.bf16.msra.mxu1 %v396_v22  ;;  %v501_v53 = vld [vmem:[%s698_s4] ss:$0 sm:$0xff] }
  0x19   : > { %v502_v56 = vld [vmem:[%s699_s5] ss:$0 sm:$0xff] }
  0x1a   : > { %353 = vmatpush.bf16.msra.mxu0 %v342_v19  ;;  %v503_v62 = vld [vmem:[%s701_s7] ss:$0 sm:$0xff] }
  0x1c   : > { %406 = vmatpush.bf16.msra.mxu1 %v395_v28 }
  0x1e   : > { %354 = vmatpush.bf16.msra.mxu0 %v341_v25 }
  0x20   : > { %407 = vmatpush.bf16.msra.mxu1 %v394_v34 }
  0x22   : > { %355 = vmatpush.bf16.msra.mxu0 %v340_v31 }
  0x24   : > { %408 = vmatpush.bf16.msra.mxu1 %v393_v45 }
  0x26   : > { %356 = vmatpush.bf16.msra.mxu0 %v339_v35 }
  0x28   : > { %409 = vmatpush.bf16.msra.mxu1 %v392_v48 }
  0x2a   : > { %357 = vmatpush.bf16.msra.mxu0 %v338_v41 }
  0x2c   : > { %410 = vmatpush.bf16.msra.mxu1 %v391_v51 }
  0x2d   : > { %358 = vmatmul.bf16.vlgmr.msra.gmra.mxu0 %v321_v42 }
  0xaa   : > { %v359_v54 = vpop.f32.mrf.mxu0 }
  0xab   : > { %v360_v55 = vadd.f32 %v500_v52, %v359_v54 }
  0xad   : > { %v367_v57 = vmul.f32 %v501_v53, %v360_v55 }
  0xaf   : > { %v372_v58 = vadd.f32 %v502_v56, %v367_v57 }
  0xb1   : > { %v373_v59 = vmax.f32 %v372_v58, 0.0 }
  0xb2   : > { %v361_v60 = vpop.f32.mrf.mxu0 }
  0xb3   : > { %v374_v61 = vpack.c.bf16 %v373_v59, %v373_v59 }
  0xb5   : > { %411 = vmatmul.bf16.vlgmr.msra.gmra.mxu1 %v374_v61 }
 0x132   : > { %v412_v63 = vpop.f32.mrf.mxu1 }
 0x133   : > { %v413_v0 = vadd.f32 %v503_v62, %v412_v63 }
 0x135   : > { %416 = vst [vmem:[%s317_s30] sm:$0xff] %v413_v0 }
 0x13a   : > { %v414_v1 = vpop.f32.mrf.mxu1 }
 0x13b PF: > { %s18_s27 = sadd.s32 1, %s510_s27  }
 0x13c   : > { %p15_p4 = scmp.ge.s32.totalorder %s18_s27, 6  }
 0x13e   :  { %17 = sbr.rel (!%p15_p4) target bundleno = 1 (0x1), region = 85 }

</bundles_post_ra>
